<compile_context>
chip_gen: v6e
topology: v6e:2x2x1
jax: 0.10.0
libtpu: 0.0.40
codegen_flags: <defaults>
</compile_context>

<pallas_src>
import jax
import jax.numpy as jnp
from jax.experimental import pallas as pl
from jax.experimental.pallas import tpu as pltpu


def linear_relu_kernel(x_ref, w_ref, b_ref, o_ref):
    # x_ref: (M, K) f32, w_ref: (K, N) f32, b_ref: (1, N) f32, o_ref: (M, N) f32
    acc = jnp.dot(x_ref[...], w_ref[...], preferred_element_type=jnp.float32)
    # v1 = x @ W^T + b ; v2 = v1 - 0 (no-op, elided) ; v3 = relu(v2)
    o_ref[...] = jnp.maximum(acc + b_ref[...], 0.0)


@jax.jit
def linear_relu(x, w_t, b2d):
    """x: (M, K) f32, w_t: (K, N) f32 (pre-transposed weight), b2d: (1, N) f32."""
    M, K = x.shape
    Kw, N = w_t.shape
    assert K == Kw and b2d.shape == (1, N)

    cost = pl.CostEstimate(
        flops=2 * M * K * N,
        transcendentals=0,
        bytes_accessed=4 * (M * K + K * N + N + M * N),
    )

    vmem_spec = pl.BlockSpec(memory_space=pltpu.MemorySpace.VMEM)

    # Gridless single-shot call: every operand is a single full block in VMEM,
    # no grid machinery, no padding/slicing plumbing around the custom call.
    out = pl.pallas_call(
        linear_relu_kernel,
        out_shape=jax.ShapeDtypeStruct((M, N), jnp.float32),
        in_specs=[vmem_spec, vmem_spec, vmem_spec],
        out_specs=vmem_spec,
        cost_estimate=cost,
    )(x, w_t, b2d)

    # TODO(synk): if batch (M) ever grows large, add a grid over M with
    # x/out blocked as (tm, K)/(tm, N), the weight/bias blocks pinned via
    # index_map lambda i: (0, 0), and that axis marked "parallel"
    # (shards across v7x's 2 TensorCores; no-op on v5e/v6e).
    return out


if __name__ == "__main__":
    key = jax.random.PRNGKey(0)
    kx, kw, kb = jax.random.split(key, 3)

    in_features = 100
    out_features = 84
    batch = 10

    # Deterministic parameter init (PyTorch-like uniform(-1/sqrt(fan_in), ...)).
    bound = 1.0 / (in_features ** 0.5)
    weight = jax.random.uniform(kw, (out_features, in_features),
                                dtype=jnp.float32, minval=-bound, maxval=bound)
    bias = jax.random.uniform(kb, (out_features,),
                              dtype=jnp.float32, minval=-bound, maxval=bound)

    x = jax.random.normal(kx, (batch, in_features), dtype=jnp.float32)

    # Per-call-invariant shaping done ONCE at parameter-init time:
    w_t = jnp.asarray(weight.T)            # (K, N)
    b2d = jnp.asarray(bias.reshape(1, -1))  # (1, N)

    out = linear_relu(x, w_t, b2d)
    out = jax.block_until_ready(out)

    # Reference check (plain JAX), matching the PyTorch forward exactly.
    ref = jnp.maximum(x @ w_t + bias[None, :] - 0.0, 0.0)
    assert out.shape == (batch, out_features)
    assert jnp.allclose(out, ref, atol=1e-5, rtol=1e-5)

    print("KERNEL_OK")
</pallas_src>

<mosaic_0001>
module attributes {stable_mosaic.version = 11 : i64} {
  func.func @linear_relu_kernel(%arg0: memref<10x100xf32, #tpu.memory_space<vmem>>, %arg1: memref<100x84xf32, #tpu.memory_space<vmem>>, %arg2: memref<1x84xf32, #tpu.memory_space<vmem>>, %arg3: memref<10x84xf32, #tpu.memory_space<vmem>>) attributes {dimension_semantics = [], scalar_prefetch = 0 : i64, scratch_operands = 0 : i64, tpu.core_type = #tpu.core_type<tc>} {
    %c0 = arith.constant 0 : index
    %c0_0 = arith.constant 0 : index
    %0 = vector.load %arg0[%c0, %c0_0] : memref<10x100xf32, #tpu.memory_space<vmem>>, vector<10x100xf32>
    %c0_1 = arith.constant 0 : index
    %c0_2 = arith.constant 0 : index
    %1 = vector.load %arg1[%c0_1, %c0_2] : memref<100x84xf32, #tpu.memory_space<vmem>>, vector<100x84xf32>
    %cst = arith.constant dense<0.000000e+00> : vector<10x84xf32>
    %2 = tpu.matmul %0, %1, %cst {dimension_numbers = #tpu.dot_dimension_numbers<[1], [0], [0], [1], [0, 0, 1, 1], [], []>} : vector<10x100xf32>, vector<100x84xf32>, vector<10x84xf32> -> vector<10x84xf32>
    %c0_3 = arith.constant 0 : index
    %c0_4 = arith.constant 0 : index
    %3 = vector.load %arg2[%c0_3, %c0_4] : memref<1x84xf32, #tpu.memory_space<vmem>>, vector<1x84xf32>
    %4 = vector.broadcast %3 : vector<1x84xf32> to vector<10x84xf32>
    %5 = arith.addf %2, %4 : vector<10x84xf32>
    %cst_5 = arith.constant 0.000000e+00 : f32
    %6 = vector.broadcast %cst_5 : f32 to vector<10x84xf32>
    %7 = arith.maximumf %5, %6 : vector<10x84xf32>
    %c0_6 = arith.constant 0 : index
    %c0_7 = arith.constant 0 : index
    %8 = vector.load %arg3[%c0_6, %c0_7] : memref<10x84xf32, #tpu.memory_space<vmem>>, vector<10x84xf32>
    tpu.vector_store %arg3[%c0_6, %c0_7], %7 {strides = array<i32>} : memref<10x84xf32, #tpu.memory_space<vmem>>, vector<10x84xf32>,
    return
  }
}

</mosaic_0001>

<bundles_post_ra>
// kernel: linear_relu.1
= control target key start
LH: loop header
LB: loop body
LE: loop exit
PB: predicated region body
PF: predicated region fallthrough
CT: control target
= control target key end

     0   :  { %vm44_vm0 = vcmask 1043456   ;;  %vm37_vm1 = vcmask 818176   ;;  %s294_s0 = inlined_call_operand.vmem [shape: f32[10,100], index: 0, kind: input, shape index: {}]   ;;  %s295_s1 = inlined_call_operand.vmem [shape: f32[100,84], index: 1, kind: input, shape index: {}]   ;;  %s296_s2 = inlined_call_operand.vmem [shape: f32[1,84], index: 2, kind: input, shape index: {}]   ;;  %s297_s3 = inlined_call_operand.hbm [shape: f32[10,84], index: 3, kind: output, shape index: {}]  }
   0x1   :  { %v29_v0 = vld [vmem:[%s295_s1 + $0x60] sm:$0xf]  ;;  %v28_v1 = vld [vmem:[%s295_s1 + $0x58] sm:$0xff]  ;;  %v27_v2 = vld [vmem:[%s295_s1 + $0x50] sm:$0xff] }
   0x2   :  { %164 = vmatprep.subr.msk.mxu0 %vm44_vm0, %v29_v0  ;;  %v26_v3 = vld [vmem:[%s295_s1 + $0x48] sm:$0xff]  ;;  %v15_v4 = vld [vmem:[%s294_s0] sm:$0xff] }
   0x3   :  { %165 = vmatpush3.msk.msra.mxu0 %vm44_vm0, %v29_v0  ;;  %190 = vmatprep.mubr.msk.f32.mxu0 %vm37_vm1, %v15_v4 }
   0x4   :  { %166 = vmatprep.subr.mxu0 %v28_v1 }
   0x5   :  { %167 = vmatpush3.msra.mxu0 %v28_v1 }
   0x6   :  { %168 = vmatprep.subr.mxu0 %v27_v2 }
   0x7   :  { %8 = vsyncpa [#allocation3], 0  ;;  %169 = vmatpush3.msra.mxu0 %v27_v2  ;;  %v25_v5 = vld [vmem:[%s295_s1 + $0x40] sm:$0xff]  ;;  %v24_v6 = vld [vmem:[%s295_s1 + $0x38] sm:$0xff]  ;;  %s218_s17 = smov [#allocation2]   ;;  %vm127_vm2 = vcmask 680960  }
   0x8   :  { %170 = vmatprep.subr.mxu0 %v26_v3  ;;  %v23_v7 = vld [vmem:[%s295_s1 + $0x30] sm:$0xff]  ;;  %v22_v8 = vld [vmem:[%s295_s1 + $0x28] sm:$0xff]  ;;  %v21_v9 = vld [vmem:[%s295_s1 + $0x20] sm:$0xff]  ;;  %s134_s18 = sshll.u32 %s218_s17, 4  ;;  %vm125_vm3 = vcmask 687104   ;;  %s135_s18 = int_to_ptr.vmem [resolvable:$true] %s134_s18 }
   0x9   :  { %171 = vmatpush3.msra.mxu0 %v26_v3  ;;  %v20_v10 = vld [vmem:[%s295_s1 + $0x18] sm:$0xff]  ;;  %v19_v11 = vld [vmem:[%s295_s1 + $0x10] sm:$0xff]  ;;  %v18_v12 = vld [vmem:[%s295_s1 + $0x8] sm:$0xff]  ;;  %p201_p1 = scmp.lt.s32.totalorder %s135_s18, %s135_s18 }
   0xa   :  { %172 = vmatprep.subr.mxu0 %v25_v5  ;;  %v17_v13 = vld [vmem:[%s295_s1] sm:$0xff]  ;;  %v16_v14 = vld [vmem:[%s294_s0 + $0x8] sm:$0x3]  ;;  %s196_s0 = scalar_lea.vmem %s135_s18, 256 }
   0xb   :  { %173 = vmatpush3.msra.mxu0 %v25_v5  ;;  %v145_v15 = vld [vmem:[%s296_s2] ss:$0 sm:$0xff]  ;;  %p197_p0 = scmp.ne.s32.totalorder %s135_s18, %s196_s0  ;;  %p202_p2 = scmp.lt.s32.totalorder %s196_s0, %s196_s0 }
   0xc   :  { %174 = vmatprep.subr.mxu0 %v24_v6 }
   0xd   :  { %175 = vmatpush3.msra.mxu0 %v24_v6  ;;  %p203_p3 = por %p202_p2, %p201_p1 }
   0xe   :  { %176 = vmatprep.subr.mxu0 %v23_v7 }
   0xf   :  { %177 = vmatpush3.msra.mxu0 %v23_v7  ;;  %p204_p4 = pnand %p203_p3, %p197_p0 }
  0x10   :  { %178 = vmatprep.subr.mxu0 %v22_v8 }
  0x11   :  { %179 = vmatpush3.msra.mxu0 %v22_v8 }
  0x12   :  { %180 = vmatprep.subr.mxu0 %v21_v9 }
  0x13   :  { %181 = vmatpush3.msra.mxu0 %v21_v9 }
  0x14   :  { %182 = vmatprep.subr.mxu0 %v20_v10 }
  0x15   :  { %183 = vmatpush3.msra.mxu0 %v20_v10 }
  0x16   :  { %184 = vmatprep.subr.mxu0 %v19_v11 }
  0x17   :  { %185 = vmatpush3.msra.mxu0 %v19_v11 }
  0x18   :  { %186 = vmatprep.subr.mxu0 %v18_v12 }
  0x19   :  { %187 = vmatpush3.msra.mxu0 %v18_v12 }
  0x1a   :  { %188 = vmatprep.subr.mxu0 %v17_v13 }
  0x1b   :  { %189 = vmatpush3.msra.mxu0 %v17_v13 }
  0x1c   :  { %191 = vmatmul.mubr.msk.f32.vlgmr.msra.gmra.mxu0 %vm37_vm1, %v16_v14 }
  0xdc   :  { %v192_v16 = vpop.f32.mrf.mxu0 }
  0xdd   :  { %v120_v17 = vadd.f32 %v192_v16, %v145_v15 }
  0xde   :  { %v114_v18 = vpop.f32.mrf.mxu0 }
  0xdf   :  { %v124_v19 = vmax.f32 %v120_v17, 0.0  ;;  %v115_v20 = vadd.f32 %v145_v15, %v114_v18 }
  0xe1   :  { %128 = vst.msk [vmem:[#allocation2 + $0x8] sm:$0x3] %vm127_vm2, %v124_v19  ;;  %v123_v21 = vmax.f32 %v115_v20, 0.0 }
  0xe3   :  { %126 = vst.msk [vmem:[#allocation2] sm:$0xff] %vm125_vm3, %v123_v21 }
  0xe4   :  { %207 = shalt.err (!%p204_p4)
}
  0xe5   :  { %s219_s1 = smov 128   ;;  %s220_s2 = smov 8  }
  0xe6   :  { %140 = dma.vmem_to_hbm [thread:$0]  %s135_s18, 256, %s297_s3, [#allocation3], %s219_s1, %s219_s1, %s220_s2  }
  0xe7   :  { %216 = dma.done.wait [#allocation3], 256  }
  0xe8   :  { %217 = vsyncadd [#allocation3], 4294967040 }
  0xe9   :  { %144 = vsyncpa [#allocation3], 1 }

</bundles_post_ra>
